<compile_context>
chip_gen: v7x
topology: tpu7x:2x2x1
jax: 0.10.0
libtpu: 0.0.40
codegen_flags: <defaults>
</compile_context>

<pallas_src>
import functools
import math

import numpy as np
import jax
import jax.numpy as jnp
from jax import lax
from jax.experimental import pallas as pl
from jax.experimental.pallas import tpu as pltpu


# ----------------------------------------------------------------------------
# Torch-exact bilinear interpolation weights (align_corners=False).
# ----------------------------------------------------------------------------
@functools.lru_cache(maxsize=64)
def _torch_bilinear_matrix(out_size: int, in_size: int, scale: float) -> np.ndarray:
    """Row-interpolation matrix reproducing torch.nn.functional.interpolate
    (mode='bilinear', align_corners=False) along one axis.

    `scale` is the user-facing scale_factor for this axis; the half-pixel
    mapping uses 1/scale (PyTorch with an explicit scale_factor)."""
    inv_scale = 1.0 / float(scale) if scale and scale > 0 else in_size / out_size
    idx = np.arange(out_size, dtype=np.float64)
    src = (idx + 0.5) * inv_scale - 0.5
    src = np.maximum(src, 0.0)                       # torch clamps src to >= 0
    lo = np.floor(src).astype(np.int64)
    lo = np.minimum(lo, in_size - 1)
    lam = src - lo
    hi = np.minimum(lo + 1, in_size - 1)
    mat = np.zeros((out_size, in_size), dtype=np.float32)
    mat[np.arange(out_size), lo] += (1.0 - lam).astype(np.float32)
    mat[np.arange(out_size), hi] += lam.astype(np.float32)
    return mat


@functools.lru_cache(maxsize=64)
def _device_weights(h_out, h_in, sh, w_out, w_in, sw, dtype_name):
    """Constant per (shape, scale, dtype): build once, keep on device."""
    a_h = jnp.asarray(_torch_bilinear_matrix(h_out, h_in, sh), dtype=dtype_name)
    a_wt = jnp.asarray(
        np.ascontiguousarray(_torch_bilinear_matrix(w_out, w_in, sw).T),
        dtype=dtype_name)
    return a_h, a_wt


# ----------------------------------------------------------------------------
# Kernel: one plane-batch x one H_out tile per grid step (ht innermost).
# ----------------------------------------------------------------------------
def _interp_kernel(ah_ref, x_ref, awt_ref, o_ref, y_ref):
    # ah_ref : (TILE_HO, H_in)   H-interp weights, sliced per H_out tile
    # x_ref  : (B, H_in, W_in)   batch of (n, c) planes, native dtype
    # awt_ref: (W_in, W_out)     W-interp weights, transposed
    # o_ref  : (B, TILE_HO, W_out)
    # y_ref  : (B, H_in, W_out)  VMEM scratch; persists across the ht axis
    b, h_in, w_in = x_ref.shape
    tile_ho = ah_ref.shape[0]
    w_out = awt_ref.shape[1]
    cdt = awt_ref.dtype                              # compute dtype (bf16 or f32)

    # --- W-pass: one big folded MXU matmul, computed once per plane block ---
    @pl.when(pl.program_id(1) == 0)
    def _():
        x = x_ref[...].astype(cdt)
        y = jnp.dot(x.reshape(b * h_in, w_in), awt_ref[...],
                    preferred_element_type=jnp.float32)       # (B*H_in, W_out) f32
        y_ref[...] = y.reshape(b, h_in, w_out).astype(y_ref.dtype)

    # --- H-pass: batched contraction over H_in, in the narrow dtype ---
    ah = ah_ref[...]                                           # (TILE_HO, H_in) cdt
    ah_b = jnp.broadcast_to(ah[None], (b, tile_ho, h_in))      # narrow dtype
    out = lax.dot_general(
        ah_b, y_ref[...],
        dimension_numbers=(((2,), (1,)), ((0,), (0,))),
        preferred_element_type=jnp.float32)                    # (B, TILE_HO, W_out)

    o_ref[...] = out.astype(o_ref.dtype)


# ----------------------------------------------------------------------------
# Hardware query (chip-gated VMEM budget + TensorCore count heuristic).
# ----------------------------------------------------------------------------
def _tpu_vmem_and_cores():
    try:
        info = pltpu.get_tpu_info()
        vmem = int(getattr(info, "vmem_capacity_bytes"))
        # v7x has 64 MiB VMEM per TensorCore and 2 TCs per chip; v5e/v6e 128 MiB, 1 TC.
        two_tc = vmem <= (64 << 20)
        return vmem, two_tc
    except Exception:
        # Conservative fallback (v7x-safe), assume single TC for batching.
        return 64 << 20, False


# ----------------------------------------------------------------------------
# Block-size selection (VMEM-budgeted, counts f32 intermediates).
# ----------------------------------------------------------------------------
def _select_tiling(p, h_in, w_in, h_out, w_out, x_item, c_item, budget, two_tc):
    # Constant (weight) blocks, double-buffered (worst case: full A_h tile).
    const = 2 * (h_out * h_in + w_in * w_out) * c_item

    def per_plane(tile_ho):
        return (2 * h_in * w_in * x_item            # x block (double-buffered)
                + 2 * tile_ho * w_out * x_item      # out block (double-buffered)
                + h_in * w_out * (c_item + 4)       # y scratch + f32 W-pass temp
                + tile_ho * h_in * c_item           # broadcast A_h
                + tile_ho * w_out * 4)              # f32 H-pass result temp

    # H_out tile: only shrink (to multiples of 8) if even one full-H_out plane
    # does not fit the budget.
    tile_ho = h_out
    while (const + per_plane(tile_ho) > budget
           and tile_ho % 2 == 0 and (tile_ho // 2) % 8 == 0):
        tile_ho //= 2

    # Planes per grid step.
    avail = max(0, budget - const)
    b = int(max(1, min(p, avail // max(1, per_plane(tile_ho)))))
    if two_tc and p >= 2:            # keep >= 2 plane blocks only for v7x's 2 TCs
        b = min(b, (p + 1) // 2)
    # Prefer a divisor of p (avoids padding) if it costs < 2x.
    best_div = max(d for d in range(1, b + 1) if p % d == 0)
    if best_div * 2 >= b:
        b = best_div
    pad = (-p) % b
    return b, tile_ho, pad


def _as_pair(scale_factor):
    if isinstance(scale_factor, (tuple, list)):
        sh, sw = scale_factor
    else:
        sh = sw = scale_factor
    return float(sh), float(sw)


# ----------------------------------------------------------------------------
# Public wrapper.
# ----------------------------------------------------------------------------
def interpolate_bilinear(x: jax.Array, scale_factor=2) -> jax.Array:
    """Pallas equivalent of Interpolate(mode='bilinear', scale_factor)(x), NCHW.
    Output size follows torch: floor(in_size * scale_factor)."""
    n, c, h_in, w_in = x.shape
    sh, sw = _as_pair(scale_factor)
    h_out = int(math.floor(h_in * sh))
    w_out = int(math.floor(w_in * sw))

    # Weights / compute dtype: bf16 for bf16 inputs (bf16 MXU rate), f32 else.
    is_bf16 = x.dtype == jnp.dtype(jnp.bfloat16)
    c_dtype = jnp.bfloat16 if is_bf16 else jnp.float32
    a_h, a_wt = _device_weights(h_out, h_in, sh, w_out, w_in, sw,
                                jnp.dtype(c_dtype).name)

    p = n * c
    x_item = jnp.dtype(x.dtype).itemsize
    c_item = jnp.dtype(c_dtype).itemsize

    vmem_phys, two_tc = _tpu_vmem_and_cores()
    vmem_limit = min(vmem_phys * 3 // 4, 96 << 20)   # 96 MiB on v5e/v6e, 48 MiB on v7x
    budget = vmem_limit * 2 // 3                     # target live block+scratch bytes

    b, tile_ho, pad = _select_tiling(p, h_in, w_in, h_out, w_out,
                                     x_item, c_item, budget, two_tc)

    x_flat = x.reshape(p, h_in, w_in)
    if pad:
        x_flat = jnp.concatenate(
            [x_flat, jnp.zeros((pad, h_in, w_in), x.dtype)], axis=0)
    p_pad = p + pad

    grid = (p_pad // b, h_out // tile_ho)

    out_flat = pl.pallas_call(
        _interp_kernel,
        out_shape=jax.ShapeDtypeStruct((p_pad, h_out, w_out), x.dtype),
        grid_spec=pltpu.PrefetchScalarGridSpec(
            num_scalar_prefetch=0,
            grid=grid,
            in_specs=[
                pl.BlockSpec((tile_ho, h_in), lambda pb, ht: (ht, 0)),
                pl.BlockSpec((b, h_in, w_in), lambda pb, ht: (pb, 0, 0)),
                pl.BlockSpec((w_in, w_out), lambda pb, ht: (0, 0)),
            ],
            out_specs=pl.BlockSpec((b, tile_ho, w_out), lambda pb, ht: (pb, ht, 0)),
            scratch_shapes=[pltpu.VMEM((b, h_in, w_out), c_dtype)],
        ),
        compiler_params=pltpu.CompilerParams(
            # ht must be "arbitrary": the W-pass result in scratch is reused
            # across H_out tiles of the same plane block.
            dimension_semantics=("parallel", "arbitrary"),
            vmem_limit_bytes=int(vmem_limit),
        ),
    )(a_h, x_flat, a_wt)

    if pad:
        out_flat = out_flat[:p]
    return out_flat.reshape(n, c, h_out, w_out)


class Interpolate:
    """Mirror of the PyTorch module (bilinear, align_corners=False)."""

    def __init__(self, mode, scale_factor):
        if mode != "bilinear":
            # TODO(synk): only mode='bilinear' is implemented in the Pallas kernel.
            raise NotImplementedError(f"mode={mode!r} not supported")
        self.scale_factor = scale_factor

    def __call__(self, x):
        return interpolate_bilinear(x, scale_factor=self.scale_factor)


# ----------------------------------------------------------------------------
# Pure-JAX reference (identical torch-exact weights) + self-test.
# ----------------------------------------------------------------------------
def _reference(x, scale_factor=2):
    n, c, h, w = x.shape
    sh, sw = _as_pair(scale_factor)
    h_out = int(math.floor(h * sh))
    w_out = int(math.floor(w * sw))
    a_h = jnp.asarray(_torch_bilinear_matrix(h_out, h, sh))
    a_w = jnp.asarray(_torch_bilinear_matrix(w_out, w, sw))
    return jnp.einsum("oh,nchw,pw->ncop", a_h, x.astype(jnp.float32), a_w).astype(x.dtype)


if __name__ == "__main__":
    key = jax.random.PRNGKey(0)
    # Module instantiation: Interpolate(mode='bilinear', scale_factor=2)
    module = Interpolate(mode="bilinear", scale_factor=2)
    x = jax.random.normal(key, (2, 4, 16, 16), dtype=jnp.float32)

    y = module(x)
    y = jax.block_until_ready(y)

    ref = _reference(x, scale_factor=2)
    assert y.shape == (2, 4, 32, 32), y.shape
    np.testing.assert_allclose(np.asarray(y), np.asarray(ref), rtol=1e-5, atol=1e-5)

    print("KERNEL_OK")
</pallas_src>

<mosaic_0001>
module attributes {stable_mosaic.version = 11 : i64} {
  func.func @_interp_kernel(%arg0: i32, %arg1: i32, %arg2: memref<32x16xf32, #tpu.memory_space<vmem>>, %arg3: memref<8x16x16xf32, #tpu.memory_space<vmem>>, %arg4: memref<16x32xf32, #tpu.memory_space<vmem>>, %arg5: memref<8x32x32xf32, #tpu.memory_space<vmem>>, %arg6: memref<8x16x32xf32, #tpu.memory_space<vmem>>) attributes {dimension_semantics = [#tpu.dimension_semantics<parallel>, #tpu.dimension_semantics<arbitrary>], iteration_bounds = array<i64: 1, 1>, scalar_prefetch = 0 : i64, scratch_operands = 1 : i64, tpu.core_type = #tpu.core_type<tc>, window_params = [{transform_indices = @transform_0, window_bounds = array<i64: 32, 16>}, {transform_indices = @transform_1, window_bounds = array<i64: 8, 16, 16>}, {pipeline_mode = #tpu.pipeline_mode<synchronous>, transform_indices = @transform_2, window_bounds = array<i64: 16, 32>}, {transform_indices = @transform_3, window_bounds = array<i64: 8, 32, 32>}]} {
    %c0_i32 = arith.constant 0 : i32
    %0 = arith.cmpi eq, %arg1, %c0_i32 : i32
    %1 = arith.extui %0 : i1 to i32
    %c0_i32_0 = arith.constant 0 : i32
    %2 = arith.cmpi ne, %1, %c0_i32_0 : i32
    scf.if %2 {
      %c0_8 = arith.constant 0 : index
      %c0_9 = arith.constant 0 : index
      %c0_10 = arith.constant 0 : index
      %10 = vector.load %arg3[%c0_8, %c0_9, %c0_10] : memref<8x16x16xf32, #tpu.memory_space<vmem>>, vector<8x16x16xf32>
      %11 = vector.shape_cast %10 : vector<8x16x16xf32> to vector<128x16xf32>
      %c0_11 = arith.constant 0 : index
      %c0_12 = arith.constant 0 : index
      %12 = vector.load %arg4[%c0_11, %c0_12] : memref<16x32xf32, #tpu.memory_space<vmem>>, vector<16x32xf32>
      %cst_13 = arith.constant dense<0.000000e+00> : vector<128x32xf32>
      %13 = tpu.matmul %11, %12, %cst_13 {dimension_numbers = #tpu.dot_dimension_numbers<[1], [0], [0], [1], [0, 0, 1, 1], [], []>} : vector<128x16xf32>, vector<16x32xf32>, vector<128x32xf32> -> vector<128x32xf32>
      %14 = vector.shape_cast %13 : vector<128x32xf32> to vector<8x16x32xf32>
      %c0_14 = arith.constant 0 : index
      %c0_15 = arith.constant 0 : index
      %c0_16 = arith.constant 0 : index
      %15 = vector.load %arg6[%c0_14, %c0_15, %c0_16] : memref<8x16x32xf32, #tpu.memory_space<vmem>>, vector<8x16x32xf32>
      tpu.vector_store %arg6[%c0_14, %c0_15, %c0_16], %14 {strides = array<i32>} : memref<8x16x32xf32, #tpu.memory_space<vmem>>, vector<8x16x32xf32>,
    } else {
    }
    %c0 = arith.constant 0 : index
    %c0_1 = arith.constant 0 : index
    %3 = vector.load %arg2[%c0, %c0_1] : memref<32x16xf32, #tpu.memory_space<vmem>>, vector<32x16xf32>
    %4 = vector.shape_cast %3 : vector<32x16xf32> to vector<1x32x16xf32>
    %5 = vector.shape_cast %4 : vector<1x32x16xf32> to vector<1x32x16xf32>
    %6 = vector.broadcast %5 : vector<1x32x16xf32> to vector<8x32x16xf32>
    %c0_2 = arith.constant 0 : index
    %c0_3 = arith.constant 0 : index
    %c0_4 = arith.constant 0 : index
    %7 = vector.load %arg6[%c0_2, %c0_3, %c0_4] : memref<8x16x32xf32, #tpu.memory_space<vmem>>, vector<8x16x32xf32>
    %cst = arith.constant dense<0.000000e+00> : vector<8x32x32xf32>
    %8 = tpu.matmul %6, %7, %cst {dimension_numbers = #tpu.dot_dimension_numbers<[2], [1], [1], [2], [0, 0, 0, 1, 1, 2], [0], [0]>} : vector<8x32x16xf32>, vector<8x16x32xf32>, vector<8x32x32xf32> -> vector<8x32x32xf32>
    %c0_5 = arith.constant 0 : index
    %c0_6 = arith.constant 0 : index
    %c0_7 = arith.constant 0 : index
    %9 = vector.load %arg5[%c0_5, %c0_6, %c0_7] : memref<8x32x32xf32, #tpu.memory_space<vmem>>, vector<8x32x32xf32>
    tpu.vector_store %arg5[%c0_5, %c0_6, %c0_7], %8 {strides = array<i32>} : memref<8x32x32xf32, #tpu.memory_space<vmem>>, vector<8x32x32xf32>,
    return
  }
  func.func @transform_0(%arg0: i32, %arg1: i32) -> (i32, i32) {
    %c0_i32 = arith.constant 0 : i32
    %c0_i32_0 = arith.constant 0 : i32
    return %arg1, %c0_i32 : i32, i32
  }
  func.func @transform_1(%arg0: i32, %arg1: i32) -> (i32, i32, i32) {
    %c0_i32 = arith.constant 0 : i32
    %c0_i32_0 = arith.constant 0 : i32
    %c0_i32_1 = arith.constant 0 : i32
    return %arg0, %c0_i32, %c0_i32_0 : i32, i32, i32
  }
  func.func @transform_2(%arg0: i32, %arg1: i32) -> (i32, i32) {
    %c0_i32 = arith.constant 0 : i32
    %c0_i32_0 = arith.constant 0 : i32
    %c0_i32_1 = arith.constant 0 : i32
    return %c0_i32, %c0_i32_0 : i32, i32
  }
  func.func @transform_3(%arg0: i32, %arg1: i32) -> (i32, i32, i32) {
    %c0_i32 = arith.constant 0 : i32
    %c0_i32_0 = arith.constant 0 : i32
    return %arg0, %arg1, %c0_i32 : i32, i32, i32
  }
}

</mosaic_0001>

<bundles_post_ra>
// kernel: tpu_custom_call.1
= control target key start
LH: loop header
LB: loop body
LE: loop exit
PB: predicated region body
PF: predicated region fallthrough
CT: control target
= control target key end

     0   :  { %8 = vsyncpa [#allocation4], 0  ;;  %s1543_s0 = inlined_call_operand.vmem [shape: f32[32,16], index: 0, kind: input, shape index: {}]   ;;  %s1544_s1 = inlined_call_operand.hbm [shape: f32[8,16,16], index: 1, kind: input, shape index: {}]   ;;  %s1545_s2 = inlined_call_operand.vmem [shape: f32[16,32], index: 2, kind: input, shape index: {}]   ;;  %s1546_s3 = inlined_call_operand.hbm [shape: f32[8,32,32], index: 3, kind: output, shape index: {}]  }
   0x1   :  { %9 = vsyncpa [#allocation5], 0  ;;  %s1335_s12 = smov [#allocation3]   ;;  %s1287_s16 = scalar_lea.hbm %s1544_s1, 2048 }
   0x2   :  { %s17_s13 = sshll.u32 %s1335_s12, 4  ;;  %p1288_p0 = scmp.ne.s32.totalorder %s1544_s1, %s1287_s16  ;;  %s18_s13 = int_to_ptr.vmem [resolvable:$true] %s17_s13 }
   0x3   :  { %p1291_p1 = scmp.lt.u32.totalorder %s1287_s16, %s1544_s1 }
   0x5   :  { %p1293_p2 = pnand %p1291_p1, %p1288_p0 }
   0x7   :  { %1296 = shalt.err (!%p1293_p2)
}
   0x8   :  { %s1297_s21 = scalar_lea.vmem %s18_s13, 2048  ;;  %p1302_p4 = scmp.lt.s32.totalorder %s18_s13, %s18_s13 }
   0x9   :  { %p1298_p3 = scmp.ne.s32.totalorder %s18_s13, %s1297_s21  ;;  %p1303_p5 = scmp.lt.s32.totalorder %s1297_s21, %s1297_s21 }
   0xb   :  { %p1304_p6 = por %p1303_p5, %p1302_p4 }
   0xd   :  { %p1305_p7 = pnand %p1304_p6, %p1298_p3 }
   0xf   :  { %1308 = shalt.err (!%p1305_p7)
}
  0x10   :  { %s1336_s22 = smov 128   ;;  %s1337_s23 = smov 8  }
  0x11   :  { %23 = dma.hbm_to_vmem [thread:$0]  %s1544_s1, 2048, %s18_s13, [#allocation4], %s1336_s22, %s1336_s22, %s1337_s23  }
  0x12   :  { %1331 = dma.done.wait [#allocation4], 2048  }
  0x13   :  { %1332 = vsyncadd [#allocation4], 4294965248  ;;  %vm51_vm0 = vcmask 130048   ;;  %v49_v0 = vld [vmem:[%s1545_s2] sm:$0xff]  ;;  %v50_v1 = vld [vmem:[%s1545_s2 + $0x8] sm:$0xff]  ;;  %vm245_vm1 = vcmask 261120  }
  0x14   :  { %v33_v2 = vld [vmem:[#allocation3] sm:$0xff]  ;;  %v1247_v3 = vpack.c.bf16 %v50_v1, %v49_v0  ;;  %v34_v4 = vld [vmem:[#allocation3 + $0x8] sm:$0xff]  ;;  %v35_v5 = vld [vmem:[#allocation3 + $0x10] sm:$0xff] }
  0x15   :  { %1143 = vmatprep.mubr.msk.f32.mxu0 %vm51_vm0, %v33_v2  ;;  %v36_v6 = vld [vmem:[#allocation3 + $0x18] sm:$0xff]  ;;  %v37_v7 = vld [vmem:[#allocation3 + $0x20] sm:$0xff]  ;;  %v38_v8 = vld [vmem:[#allocation3 + $0x28] sm:$0xff] }
  0x16   :  { %1248 = vmatprep.subr.bf16.mxu0 %v1247_v3  ;;  %v39_v9 = vld [vmem:[#allocation3 + $0x30] sm:$0xff]  ;;  %v40_v10 = vld [vmem:[#allocation3 + $0x38] sm:$0xff]  ;;  %v41_v11 = vld [vmem:[#allocation3 + $0x40] sm:$0xff] }
  0x17   :  { %1250 = vmatpush3.bf16.msra.mxu0 %v1247_v3  ;;  %v42_v12 = vld [vmem:[#allocation3 + $0x48] sm:$0xff]  ;;  %v43_v13 = vld [vmem:[#allocation3 + $0x50] sm:$0xff]  ;;  %v44_v14 = vld [vmem:[#allocation3 + $0x58] sm:$0xff] }
  0x18   :  { %v45_v15 = vld [vmem:[#allocation3 + $0x60] sm:$0xff]  ;;  %v46_v16 = vld [vmem:[#allocation3 + $0x68] sm:$0xff]  ;;  %v47_v17 = vld [vmem:[#allocation3 + $0x70] sm:$0xff] }
  0x19   :  { %v48_v18 = vld [vmem:[#allocation3 + $0x78] sm:$0xff]  ;;  %v1399_v19 = vld [vmem:[%s1543_s0] sm:$0xff]  ;;  %v1421_v35 = vld [vmem:[%s1543_s0 + $0x10] sm:$0xff] }
  0x1a   :  { %1144 = vmatmul.mubr.msk.f32.vlgmr.msra.gmra.mrb[0].mxu0 %vm51_vm0, %v34_v4  ;;  %1171 = vmatprep.mubr.msk.f32.mxu1 %vm51_vm0, %v1399_v19  ;;  %v1415_v32 = vld [vmem:[%s1543_s0 + $0x8] sm:$0xff]  ;;  %v1431_v39 = vld [vmem:[%s1543_s0 + $0x18] sm:$0xff]  ;;  %s1338_s0 = smov [#allocation6]  }
  0x1b   :  { %1146 = vmatprep.mubr.msk.f32.mxu0 %vm51_vm0, %v35_v5  ;;  %s1013_s9 = sshll.u32 %s1338_s0, 4  ;;  %s1014_s9 = int_to_ptr.vmem [resolvable:$true] %s1013_s9 }
  0x1c   :  { %s1309_s10 = scalar_lea.vmem %s1014_s9, 4096  ;;  %p1314_p9 = scmp.lt.s32.totalorder %s1014_s9, %s1014_s9 }
  0x1d   :  { %p1310_p8 = scmp.ne.s32.totalorder %s1014_s9, %s1309_s10  ;;  %p1315_p10 = scmp.lt.s32.totalorder %s1309_s10, %s1309_s10 }
  0x1e   :  { %1147 = vmatmul.mubr.msk.f32.gmra.mrb[2].mxu0 %vm51_vm0, %v36_v6 }
  0x1f   :  { %1149 = vmatprep.mubr.msk.f32.mxu0 %vm51_vm0, %v37_v7  ;;  %p1316_p11 = por %p1315_p10, %p1314_p9 }
  0x21   :  { %p1317_p12 = pnand %p1316_p11, %p1310_p8 }
  0x22   :  { %1150 = vmatmul.mubr.msk.f32.gmra.mrb[4].mxu0 %vm51_vm0, %v38_v8 }
  0x23   :  { %1152 = vmatprep.mubr.msk.f32.mxu0 %vm51_vm0, %v39_v9 }
  0x26   :  { %1153 = vmatmul.mubr.msk.f32.gmra.mrb[6].mxu0 %vm51_vm0, %v40_v10 }
  0x27   :  { %1155 = vmatprep.mubr.msk.f32.mxu0 %vm51_vm0, %v41_v11 }
  0x2a   :  { %1156 = vmatmul.mubr.msk.f32.gmra.mrb[8].mxu0 %vm51_vm0, %v42_v12 }
  0x2b   :  { %1158 = vmatprep.mubr.msk.f32.mxu0 %vm51_vm0, %v43_v13 }
  0x2e   :  { %1159 = vmatmul.mubr.msk.f32.gmra.mrb[10].mxu0 %vm51_vm0, %v44_v14 }
  0x2f   :  { %1161 = vmatprep.mubr.msk.f32.mxu0 %vm51_vm0, %v45_v15 }
  0x32   :  { %1162 = vmatmul.mubr.msk.f32.gmra.mrb[12].mxu0 %vm51_vm0, %v46_v16 }
  0x33   :  { %1164 = vmatprep.mubr.msk.f32.mxu0 %vm51_vm0, %v47_v17 }
  0x36   :  { %1165 = vmatmul.mubr.msk.f32.gmra.mrb[14].mxu0 %vm51_vm0, %v48_v18 }
  0x37   :  { %1211 = vmatprep.mubr.msk.f32.mxu0 %vm51_vm0, %v1399_v19 }
  0xed   :  { %v1145_v20 = vpop.f32.mrb[0].mxu0 }
  0xee   :  { %247 = vst.msk [vmem:[#allocation2 + $0x8] sm:$0xff] %vm245_vm1, %v1145_v20  ;;  %v166_v21 = vpop.f32.mrb[1].mxu0 }
  0xef   :  { %246 = vst.msk [vmem:[#allocation2] sm:$0xff] %vm245_vm1, %v166_v21 }
  0xf1   :  { %v1148_v22 = vpop.f32.mrb[2].mxu0 }
  0xf2   :  { %249 = vst.msk [vmem:[#allocation2 + $0x18] sm:$0xff] %vm245_vm1, %v1148_v22  ;;  %v176_v23 = vpop.f32.mrb[3].mxu0 }
  0xf3   :  { %248 = vst.msk [vmem:[#allocation2 + $0x10] sm:$0xff] %vm245_vm1, %v176_v23 }
  0xf5   :  { %v1151_v24 = vpop.f32.mrb[4].mxu0  ;;  %v267_v25 = vld [vmem:[#allocation2 + $0x8] sm:$0xff] }
  0xf6   :  { %251 = vst.msk [vmem:[#allocation2 + $0x28] sm:$0xff] %vm245_vm1, %v1151_v24  ;;  %v186_v26 = vpop.f32.mrb[5].mxu0  ;;  %v266_v27 = vld [vmem:[#allocation2] sm:$0xff] }
  0xf7   :  { %250 = vst.msk [vmem:[#allocation2 + $0x20] sm:$0xff] %vm245_vm1, %v186_v26  ;;  %v1251_v28 = vpack.c.bf16 %v267_v25, %v266_v27 }
  0xf9   :  { %v1154_v29 = vpop.f32.mrb[6].mxu0  ;;  %1252 = vmatprep.subr.bf16.mxu1 %v1251_v28  ;;  %v269_v30 = vld [vmem:[#allocation2 + $0x18] sm:$0xff] }
  0xfa   :  { %253 = vst.msk [vmem:[#allocation2 + $0x38] sm:$0xff] %vm245_vm1, %v1154_v29  ;;  %v196_v31 = vpop.f32.mrb[7].mxu0  ;;  %1254 = vmatpush3.bf16.msra.mxu1 %v1251_v28  ;;  %v268_v33 = vld [vmem:[#allocation2 + $0x10] sm:$0xff] }
  0xfb   :  { %252 = vst.msk [vmem:[#allocation2 + $0x30] sm:$0xff] %vm245_vm1, %v196_v31  ;;  %v1255_v34 = vpack.c.bf16 %v269_v30, %v268_v33 }
  0xfd   :  { %v1157_v36 = vpop.f32.mrb[8].mxu0  ;;  %1172 = vmatmul.mubr.msk.f32.vlgmr.msra.gmra.mrb[0].mxu1 %vm51_vm0, %v1415_v32  ;;  %1256 = vmatprep.subr.bf16.mxu1 %v1255_v34  ;;  %v271_v37 = vld [vmem:[#allocation2 + $0x28] sm:$0xff] }
  0xfe   :  { %255 = vst.msk [vmem:[#allocation2 + $0x48] sm:$0xff] %vm245_vm1, %v1157_v36  ;;  %v206_v38 = vpop.f32.mrb[9].mxu0  ;;  %1258 = vmatpush3.bf16.msra.mxu1 %v1255_v34  ;;  %1174 = vmatprep.mubr.msk.f32.mxu1 %vm51_vm0, %v1421_v35  ;;  %v270_v40 = vld [vmem:[#allocation2 + $0x20] sm:$0xff] }
  0xff   :  { %254 = vst.msk [vmem:[#allocation2 + $0x40] sm:$0xff] %vm245_vm1, %v206_v38  ;;  %v1259_v41 = vpack.c.bf16 %v271_v37, %v270_v40 }
 0x101   :  { %1175 = vmatmul.mubr.msk.f32.gmra.mrb[2].mxu1 %vm51_vm0, %v1431_v39  ;;  %1260 = vmatprep.subr.bf16.mxu1 %v1259_v41  ;;  %v273_v42 = vld [vmem:[#allocation2 + $0x38] sm:$0xff]  ;;  %v1160_v43 = vpop.f32.mrb[10].mxu0 }
 0x102   :  { %1181 = vmatprep.mubr.msk.f32.mxu1 %vm51_vm0, %v1399_v19  ;;  %v272_v44 = vld [vmem:[#allocation2 + $0x30] sm:$0xff]  ;;  %257 = vst.msk [vmem:[#allocation2 + $0x58] sm:$0xff] %vm245_vm1, %v1160_v43  ;;  %v216_v45 = vpop.f32.mrb[11].mxu0 }
 0x103   :  { %v1263_v46 = vpack.c.bf16 %v273_v42, %v272_v44  ;;  %256 = vst.msk [vmem:[#allocation2 + $0x50] sm:$0xff] %vm245_vm1, %v216_v45 }
 0x105   :  { %1182 = vmatmul.mubr.msk.f32.vlgmr.msra.gmra.mrb[4].mxu1 %vm51_vm0, %v1415_v32  ;;  %v275_v47 = vld [vmem:[#allocation2 + $0x48] sm:$0xff]  ;;  %v1163_v48 = vpop.f32.mrb[12].mxu0 }
 0x106   :  { %1262 = vmatpush3.bf16.msra.mxu1 %v1259_v41  ;;  %1184 = vmatprep.mubr.msk.f32.mxu1 %vm51_vm0, %v1421_v35  ;;  %v274_v49 = vld [vmem:[#allocation2 + $0x40] sm:$0xff]  ;;  %259 = vst.msk [vmem:[#allocation2 + $0x68] sm:$0xff] %vm245_vm1, %v1163_v48  ;;  %v226_v50 = vpop.f32.mrb[13].mxu0 }
 0x107   :  { %1264 = vmatprep.subr.bf16.mxu1 %v1263_v46  ;;  %v1267_v51 = vpack.c.bf16 %v275_v47, %v274_v49  ;;  %258 = vst.msk [vmem:[#allocation2 + $0x60] sm:$0xff] %vm245_vm1, %v226_v50 }
 0x109   :  { %1185 = vmatmul.mubr.msk.f32.gmra.mrb[6].mxu1 %vm51_vm0, %v1431_v39  ;;  %1268 = vmatprep.subr.bf16.mxu0 %v1267_v51  ;;  %v1166_v52 = vpop.f32.mrb[14].mxu0  ;;  %v277_v53 = vld [vmem:[#allocation2 + $0x58] sm:$0xff] }
 0x10a   :  { %1270 = vmatpush3.bf16.msra.mxu0 %v1267_v51  ;;  %1191 = vmatprep.mubr.msk.f32.mxu1 %vm51_vm0, %v1399_v19  ;;  %261 = vst.msk [vmem:[#allocation2 + $0x78] sm:$0xff] %vm245_vm1, %v1166_v52  ;;  %v236_v54 = vpop.f32.mrb[15].mxu0  ;;  %v276_v55 = vld [vmem:[#allocation2 + $0x50] sm:$0xff] }
 0x10b   :  { %260 = vst.msk [vmem:[#allocation2 + $0x70] sm:$0xff] %vm245_vm1, %v236_v54  ;;  %v1271_v56 = vpack.c.bf16 %v277_v53, %v276_v55 }
 0x10d   :  { %1192 = vmatmul.mubr.msk.f32.vlgmr.msra.gmra.mrb[8].mxu1 %vm51_vm0, %v1415_v32  ;;  %v279_v57 = vld [vmem:[#allocation2 + $0x68] sm:$0xff]  ;;  %1212 = vmatmul.mubr.msk.f32.vlgmr.msra.gmra.mrb[16].mxu0 %vm51_vm0, %v1415_v32 }
 0x10e   :  { %1266 = vmatpush3.bf16.msra.mxu1 %v1263_v46  ;;  %1194 = vmatprep.mubr.msk.f32.mxu1 %vm51_vm0, %v1421_v35  ;;  %v278_v58 = vld [vmem:[#allocation2 + $0x60] sm:$0xff] }
 0x10f   :  { %1272 = vmatprep.subr.bf16.mxu1 %v1271_v56  ;;  %v1275_v59 = vpack.c.bf16 %v279_v57, %v278_v58  ;;  %1214 = vmatprep.mubr.msk.f32.mxu0 %vm51_vm0, %v1421_v35 }
 0x111   :  { %1195 = vmatmul.mubr.msk.f32.gmra.mrb[10].mxu1 %vm51_vm0, %v1431_v39  ;;  %1276 = vmatprep.subr.bf16.mxu0 %v1275_v59  ;;  %v281_v60 = vld [vmem:[#allocation2 + $0x78] sm:$0xff] }
 0x112   :  { %1201 = vmatprep.mubr.msk.f32.mxu1 %vm51_vm0, %v1399_v19  ;;  %1278 = vmatpush3.bf16.msra.mxu0 %v1275_v59  ;;  %v280_v61 = vld [vmem:[#allocation2 + $0x70] sm:$0xff] }
 0x113   :  { %v1279_v62 = vpack.c.bf16 %v281_v60, %v280_v61  ;;  %1215 = vmatmul.mubr.msk.f32.gmra.mrb[18].mxu0 %vm51_vm0, %v1431_v39 }
 0x114   :  { %1231 = vmatprep.mubr.msk.f32.mxu0 %vm51_vm0, %v1399_v19 }
 0x115   :  { %1202 = vmatmul.mubr.msk.f32.vlgmr.msra.gmra.mrb[12].mxu1 %vm51_vm0, %v1415_v32 }
 0x116   :  { %1274 = vmatpush3.bf16.msra.mxu1 %v1271_v56  ;;  %1204 = vmatprep.mubr.msk.f32.mxu1 %vm51_vm0, %v1421_v35 }
 0x117   :  { %1280 = vmatprep.subr.bf16.mxu1 %v1279_v62  ;;  %1232 = vmatmul.mubr.msk.f32.vlgmr.msra.gmra.mrb[20].mxu0 %vm51_vm0, %v1415_v32 }
 0x118   :  { %1234 = vmatprep.mubr.msk.f32.mxu0 %vm51_vm0, %v1421_v35 }
 0x119   :  { %1205 = vmatmul.mubr.msk.f32.gmra.mrb[14].mxu1 %vm51_vm0, %v1431_v39 }
 0x11a   :  { %1221 = vmatprep.mubr.msk.f32.mxu1 %vm51_vm0, %v1399_v19 }
 0x11b   :  { %1235 = vmatmul.mubr.msk.f32.gmra.mrb[22].mxu0 %vm51_vm0, %v1431_v39 }
 0x11d   :  { %1222 = vmatmul.mubr.msk.f32.vlgmr.msra.gmra.mrb[16].mxu1 %vm51_vm0, %v1415_v32 }
 0x11e   :  { %1282 = vmatpush3.bf16.msra.mxu1 %v1279_v62  ;;  %1224 = vmatprep.mubr.msk.f32.mxu1 %vm51_vm0, %v1421_v35 }
 0x121   :  { %1225 = vmatmul.mubr.msk.f32.gmra.mrb[18].mxu1 %vm51_vm0, %v1431_v39 }
 0x122   :  { %1241 = vmatprep.mubr.msk.f32.mxu1 %vm51_vm0, %v1399_v19 }
 0x125   :  { %1242 = vmatmul.mubr.msk.f32.vlgmr.msra.gmra.mrb[20].mxu1 %vm51_vm0, %v1415_v32 }
 0x126   :  { %1244 = vmatprep.mubr.msk.f32.mxu1 %vm51_vm0, %v1421_v35 }
 0x129   :  { %1245 = vmatmul.mubr.msk.f32.gmra.mrb[22].mxu1 %vm51_vm0, %v1431_v39 }
 0x1d0   :  { %v1173_v63 = vpop.f32.mrb[0].mxu1 }
 0x1d1   :  { %977 = vst.msk [vmem:[#allocation6 + $0x8] sm:$0xff] %vm245_vm1, %v1173_v63  ;;  %v361_v0 = vpop.f32.mrb[1].mxu1 }
 0x1d2   :  { %976 = vst.msk [vmem:[#allocation6] sm:$0xff] %vm245_vm1, %v361_v0 }
 0x1d4   :  { %v1176_v1 = vpop.f32.mrb[2].mxu1 }
 0x1d5   :  { %979 = vst.msk [vmem:[#allocation6 + $0x18] sm:$0xff] %vm245_vm1, %v1176_v1  ;;  %v371_v2 = vpop.f32.mrb[3].mxu1 }
 0x1d6   :  { %978 = vst.msk [vmem:[#allocation6 + $0x10] sm:$0xff] %vm245_vm1, %v371_v2 }
 0x1d8   :  { %v1183_v3 = vpop.f32.mrb[4].mxu1 }
 0x1d9   :  { %981 = vst.msk [vmem:[#allocation6 + $0x28] sm:$0xff] %vm245_vm1, %v1183_v3  ;;  %v446_v4 = vpop.f32.mrb[5].mxu1 }
 0x1da   :  { %980 = vst.msk [vmem:[#allocation6 + $0x20] sm:$0xff] %vm245_vm1, %v446_v4 }
 0x1dc   :  { %v1186_v5 = vpop.f32.mrb[6].mxu1 }
 0x1dd   :  { %983 = vst.msk [vmem:[#allocation6 + $0x38] sm:$0xff] %vm245_vm1, %v1186_v5  ;;  %v456_v6 = vpop.f32.mrb[7].mxu1 }
 0x1de   :  { %982 = vst.msk [vmem:[#allocation6 + $0x30] sm:$0xff] %vm245_vm1, %v456_v6 }
 0x1e0   :  { %v1193_v7 = vpop.f32.mrb[8].mxu1  ;;  %v1213_v8 = vpop.f32.mrb[16].mxu0 }
 0x1e1   :  { %985 = vst.msk [vmem:[#allocation6 + $0x48] sm:$0xff] %vm245_vm1, %v1193_v7  ;;  %v531_v9 = vpop.f32.mrb[9].mxu1  ;;  %993 = vst.msk [vmem:[#allocation6 + $0x88] sm:$0xff] %vm245_vm1, %v1213_v8  ;;  %v701_v10 = vpop.f32.mrb[17].mxu0 }
 0x1e2   :  { %984 = vst.msk [vmem:[#allocation6 + $0x40] sm:$0xff] %vm245_vm1, %v531_v9  ;;  %992 = vst.msk [vmem:[#allocation6 + $0x80] sm:$0xff] %vm245_vm1, %v701_v10 }
 0x1e4   :  { %v1196_v11 = vpop.f32.mrb[10].mxu1 }
 0x1e5   :  { %987 = vst.msk [vmem:[#allocation6 + $0x58] sm:$0xff] %vm245_vm1, %v1196_v11  ;;  %v541_v12 = vpop.f32.mrb[11].mxu1 }
 0x1e6   :  { %986 = vst.msk [vmem:[#allocation6 + $0x50] sm:$0xff] %vm245_vm1, %v541_v12  ;;  %v1216_v13 = vpop.f32.mrb[18].mxu0 }
 0x1e7   :  { %995 = vst.msk [vmem:[#allocation6 + $0x98] sm:$0xff] %vm245_vm1, %v1216_v13  ;;  %v711_v14 = vpop.f32.mrb[19].mxu0 }
 0x1e8   :  { %v1203_v15 = vpop.f32.mrb[12].mxu1  ;;  %994 = vst.msk [vmem:[#allocation6 + $0x90] sm:$0xff] %vm245_vm1, %v711_v14 }
 0x1e9   :  { %989 = vst.msk [vmem:[#allocation6 + $0x68] sm:$0xff] %vm245_vm1, %v1203_v15  ;;  %v616_v16 = vpop.f32.mrb[13].mxu1 }
 0x1ea   :  { %988 = vst.msk [vmem:[#allocation6 + $0x60] sm:$0xff] %vm245_vm1, %v616_v16  ;;  %v1233_v17 = vpop.f32.mrb[20].mxu0 }
 0x1eb   :  { %1001 = vst.msk [vmem:[#allocation6 + $0xc8] sm:$0xff] %vm245_vm1, %v1233_v17  ;;  %v871_v18 = vpop.f32.mrb[21].mxu0 }
 0x1ec   :  { %v1206_v19 = vpop.f32.mrb[14].mxu1  ;;  %1000 = vst.msk [vmem:[#allocation6 + $0xc0] sm:$0xff] %vm245_vm1, %v871_v18 }
 0x1ed   :  { %991 = vst.msk [vmem:[#allocation6 + $0x78] sm:$0xff] %vm245_vm1, %v1206_v19  ;;  %v626_v20 = vpop.f32.mrb[15].mxu1 }
 0x1ee   :  { %990 = vst.msk [vmem:[#allocation6 + $0x70] sm:$0xff] %vm245_vm1, %v626_v20  ;;  %v1236_v21 = vpop.f32.mrb[22].mxu0 }
 0x1ef   :  { %1003 = vst.msk [vmem:[#allocation6 + $0xd8] sm:$0xff] %vm245_vm1, %v1236_v21  ;;  %v881_v22 = vpop.f32.mrb[23].mxu0 }
 0x1f0   :  { %v1223_v23 = vpop.f32.mrb[16].mxu1  ;;  %1002 = vst.msk [vmem:[#allocation6 + $0xd0] sm:$0xff] %vm245_vm1, %v881_v22 }
 0x1f1   :  { %997 = vst.msk [vmem:[#allocation6 + $0xa8] sm:$0xff] %vm245_vm1, %v1223_v23  ;;  %v786_v24 = vpop.f32.mrb[17].mxu1 }
 0x1f2   :  { %996 = vst.msk [vmem:[#allocation6 + $0xa0] sm:$0xff] %vm245_vm1, %v786_v24 }
 0x1f4   :  { %v1226_v25 = vpop.f32.mrb[18].mxu1 }
 0x1f5   :  { %999 = vst.msk [vmem:[#allocation6 + $0xb8] sm:$0xff] %vm245_vm1, %v1226_v25  ;;  %v796_v26 = vpop.f32.mrb[19].mxu1 }
 0x1f6   :  { %998 = vst.msk [vmem:[#allocation6 + $0xb0] sm:$0xff] %vm245_vm1, %v796_v26 }
 0x1f8   :  { %v1243_v27 = vpop.f32.mrb[20].mxu1 }
 0x1f9   :  { %1005 = vst.msk [vmem:[#allocation6 + $0xe8] sm:$0xff] %vm245_vm1, %v1243_v27  ;;  %v956_v28 = vpop.f32.mrb[21].mxu1 }
 0x1fa   :  { %1004 = vst.msk [vmem:[#allocation6 + $0xe0] sm:$0xff] %vm245_vm1, %v956_v28 }
 0x1fc   :  { %v1246_v29 = vpop.f32.mrb[22].mxu1 }
 0x1fd   :  { %1007 = vst.msk [vmem:[#allocation6 + $0xf8] sm:$0xff] %vm245_vm1, %v1246_v29  ;;  %v966_v30 = vpop.f32.mrb[23].mxu1 }
 0x1fe   :  { %1006 = vst.msk [vmem:[#allocation6 + $0xf0] sm:$0xff] %vm245_vm1, %v966_v30 }
 0x1ff   :  { %1320 = shalt.err (!%p1317_p12)
}
 0x200   :  { %s1321_s13 = scalar_lea.hbm %s1546_s3, 4096 }
 0x201   :  { %p1322_p13 = scmp.ne.s32.totalorder %s1546_s3, %s1321_s13  ;;  %p1325_p0 = scmp.lt.u32.totalorder %s1321_s13, %s1546_s3 }
 0x203   :  { %p1327_p1 = pnand %p1325_p0, %p1322_p13 }
 0x205   :  { %1330 = shalt.err (!%p1327_p1)
}
 0x206   :  { %1019 = dma.vmem_to_hbm [thread:$0]  %s1014_s9, 4096, %s1546_s3, [#allocation5], %s1336_s22, %s1336_s22, %s1337_s23  }
 0x207   :  { %1333 = dma.done.wait [#allocation5], 4096  }
 0x208   :  { %1334 = vsyncadd [#allocation5], 4294963200 }
 0x209   :  { %1023 = vsyncpa [#allocation4], 1 }
 0x20a   :  { %1024 = vsyncpa [#allocation5], 1 }

</bundles_post_ra>
